<compile_context>
chip_gen: v7x
topology: tpu7x:2x2x1
jax: 0.10.0
libtpu: 0.0.40
codegen_flags: <defaults>
</compile_context>

<pallas_src>
import jax
import jax.numpy as jnp
from jax.experimental import pallas as pl
from jax.experimental.pallas import tpu as pltpu


def _propagation_kernel(x_ref, halo_ref, out_ref):
    # x_ref:    (1, tH, W)    one row tile of one image
    # halo_ref: (1, 1, 2, W)  image rows just above / below the tile (edge-clamped)
    # out_ref:  (1, 5, tH, W) the five neighbour-shifted copies of the tile
    x = x_ref[0]                          # (tH, W)
    halo = halo_ref[0, 0]                 # (2, W)
    top = halo[0:1, :]                    # (1, W) row above the tile
    bot = halo[1:2, :]                    # (1, W) row below the tile

    tH, W = x.shape
    row = jax.lax.broadcasted_iota(jnp.int32, (tH, 1), 0)
    col = jax.lax.broadcasted_iota(jnp.int32, (1, W), 1)
    first_row = row == 0
    last_row = row == tH - 1
    first_col = col == 0
    last_col = col == W - 1

    # Vertical +/-1 shifts: XLU sublane roll + one-row VPU select (no concat
    # copies, no extra VMEM round trips).  tH is always a multiple of 8.
    up = jnp.where(first_row, top, pltpu.roll(x, shift=1, axis=0))       # row i -> x[i-1]
    dn = jnp.where(last_row, bot, pltpu.roll(x, shift=tH - 1, axis=0))   # row i -> x[i+1]

    lane_roll = (W % 128) == 0   # compile-time: lane roll on full-lane arrays only

    def left(a):   # col j -> a[:, j-1]; col 0 edge-replicated
        if lane_roll:
            return jnp.where(first_col, a[:, 0:1], pltpu.roll(a, shift=1, axis=1))
        return jnp.concatenate([a[:, :1], a[:, :-1]], axis=1)

    def right(a):  # col j -> a[:, j+1]; col W-1 edge-replicated
        if lane_roll:
            return jnp.where(last_col, a[:, W - 1:W], pltpu.roll(a, shift=W - 1, axis=1))
        return jnp.concatenate([a[:, 1:], a[:, -1:]], axis=1)

    # Pure copies written straight to the output planes (bit-exact, no math).
    out_ref[0, 0] = left(up)       # filter 0: up-left
    out_ref[0, 1] = x              # filter 1: center
    out_ref[0, 2] = right(dn)      # filter 2: down-right
    out_ref[0, 3] = left(dn)       # filter 3: down-left
    out_ref[0, 4] = right(up)      # filter 4: up-right


# Minimum sublane multiple per element size (f32 / bf16-f16 / int8-fp8).
_ROW_MULT = {4: 8, 2: 16, 1: 32}


def _pick_row_tile(Hp, Wp, itemsize, row_mult, n_batch,
                   vmem_budget_bytes=8 * 1024 * 1024):
    """Largest row tile (multiple of row_mult, dividing Hp) that fits the budget.

    Per-grid-step footprint: double-buffered (1 input + 5 output) planes plus
    ~4 planes of in-kernel roll/select temporaries ~= 16 * tH * Wp * itemsize.
    """
    per_row = 16 * Wp * itemsize
    max_t = max(row_mult, vmem_budget_bytes // per_row)
    if n_batch < 2:
        # Keep >= 2 parallel grid steps so both v7x TensorCores get work.
        max_t = min(max_t, max(row_mult, Hp // 2))
    if Hp <= row_mult:
        return Hp
    t = (min(max_t, Hp) // row_mult) * row_mult
    while t >= row_mult:
        if Hp % t == 0:
            return t
        t -= row_mult
    return Hp  # unreachable: Hp is always padded to a multiple of row_mult


def propagation(disparity_samples: jax.Array, *, row_tile: int | None = None,
                pad_lanes: bool | None = None) -> jax.Array:
    """disparity_samples: (N, 1, H, W) -> (N, 5, H, W). Matches Propagation.forward.

    row_tile:  override the row-tile height (must divide padded H and be a
               multiple of the dtype sublane multiple, or equal padded H).
    pad_lanes: True  -> edge-pad W to a multiple of 128 (lane-dense stores) and
                        slice back afterwards;
               False -> never pad (masked stores when W % 128 != 0);
               None  -> auto: pad only when W < 128, where masked stores hurt
                        most and the pad/slice traffic is negligible.
    """
    N, C, H, W = disparity_samples.shape
    assert C == 1, "Propagation expects a single-channel disparity map"
    dtype = disparity_samples.dtype
    itemsize = jnp.dtype(dtype).itemsize
    row_mult = _ROW_MULT.get(itemsize, 8)

    x = disparity_samples[:, 0]                           # (N, H, W) -- free squeeze

    # Lane (W) handling: optionally edge-pad to a multiple of 128.
    if pad_lanes is None:
        pad_lanes = W < 128
    Wp = ((W + 127) // 128) * 128 if (pad_lanes and W % 128 != 0) else W
    # Sublane (H) handling: edge-pad so row tiles are never ragged.
    Hp = ((H + row_mult - 1) // row_mult) * row_mult
    if (Wp != W) or (Hp != H):
        # Edge padding preserves the replication semantics at the real border;
        # the extra rows/cols are sliced off after the kernel.
        x = jnp.pad(x, ((0, 0), (0, Hp - H), (0, Wp - W)), mode="edge")

    if row_tile is None:
        tH = _pick_row_tile(Hp, Wp, itemsize, row_mult, N)
    else:
        assert Hp % row_tile == 0 and (row_tile % row_mult == 0 or row_tile == Hp), (
            f"row_tile={row_tile} must divide padded H={Hp} and be a multiple of {row_mult}")
        tH = row_tile
    n_tiles = Hp // tH

    # Halo rows (row just above / below each tile, edge-clamped), packed as ONE
    # (N, n_tiles, 2, Wp) side input -> a single tiny DMA per grid step, built
    # from plain strided slices (no gather pre-pass).
    top = jnp.concatenate([x[:, :1, :], x[:, tH - 1:Hp - tH:tH, :]], axis=1)
    bot = jnp.concatenate([x[:, tH:Hp:tH, :], x[:, Hp - 1:Hp, :]], axis=1)
    halo = jnp.stack([top, bot], axis=2)                  # (N, n_tiles, 2, Wp)

    out = pl.pallas_call(
        _propagation_kernel,
        out_shape=jax.ShapeDtypeStruct((N, 5, Hp, Wp), dtype),
        grid_spec=pltpu.PrefetchScalarGridSpec(
            num_scalar_prefetch=0,
            grid=(N, n_tiles),
            in_specs=[
                pl.BlockSpec((1, tH, Wp), lambda n, r: (n, r, 0)),
                pl.BlockSpec((1, 1, 2, Wp), lambda n, r: (n, r, 0, 0)),
            ],
            out_specs=pl.BlockSpec((1, 5, tH, Wp), lambda n, r: (n, 0, r, 0)),
        ),
        compiler_params=pltpu.CompilerParams(
            dimension_semantics=("parallel", "parallel"),
            # Keep well under the ~48 MiB that is safe on v7x (64 MiB physical VMEM).
            vmem_limit_bytes=32 * 1024 * 1024,
        ),
    )(x, halo)

    if (Wp != W) or (Hp != H):
        out = out[:, :, :H, :W]
    return out


def _reference(disparity_samples: jax.Array) -> jax.Array:
    """Pure-JAX mirror of the PyTorch forward: out[k][i,j] = x_pad[i+di, j+dj]."""
    x = jnp.pad(disparity_samples[:, 0], ((0, 0), (1, 1), (1, 1)), mode="edge")
    N, Hp, Wp = x.shape
    H, W = Hp - 2, Wp - 2
    # One-hot positions from the PyTorch module: (0,0),(1,1),(2,2),(2,0),(0,2).
    shifts = [(0, 0), (1, 1), (2, 2), (2, 0), (0, 2)]
    outs = [x[:, di:di + H, dj:dj + W] for (di, dj) in shifts]
    return jnp.stack(outs, axis=1)


if __name__ == "__main__":
    # Lane-dense path (W multiple of 128), single row tile per image.
    x = jax.random.normal(jax.random.PRNGKey(0), (2, 1, 16, 128), dtype=jnp.float32)
    out = jax.block_until_ready(propagation(x))
    assert out.shape == (2, 5, 16, 128)
    assert jnp.array_equal(out, _reference(x)), "mismatch vs reference"

    # Multi-row-tile (halo) path with an explicit row tile.
    x2 = jax.random.normal(jax.random.PRNGKey(1), (1, 1, 32, 128), dtype=jnp.float32)
    out2 = jax.block_until_ready(propagation(x2, row_tile=8))
    assert jnp.array_equal(out2, _reference(x2)), "tiled-path mismatch vs reference"

    # Auto lane-pad (W=96 < 128 -> 128) + row-pad (H=20 -> 24) + slice-back path.
    x3 = jax.random.normal(jax.random.PRNGKey(2), (1, 1, 20, 96), dtype=jnp.float32)
    out3 = jax.block_until_ready(propagation(x3))
    assert out3.shape == (1, 5, 20, 96)
    assert jnp.array_equal(out3, _reference(x3)), "padded-path mismatch vs reference"

    print("KERNEL_OK")
</pallas_src>

<mosaic_0001>
module attributes {stable_mosaic.version = 11 : i64} {
  func.func @_propagation_kernel(%arg0: i32, %arg1: i32, %arg2: memref<1x16x128xf32, #tpu.memory_space<vmem>>, %arg3: memref<1x1x2x128xf32, #tpu.memory_space<vmem>>, %arg4: memref<1x5x16x128xf32, #tpu.memory_space<vmem>>) attributes {dimension_semantics = [#tpu.dimension_semantics<parallel>, #tpu.dimension_semantics<parallel>], iteration_bounds = array<i64: 2, 1>, scalar_prefetch = 0 : i64, scratch_operands = 0 : i64, tpu.core_type = #tpu.core_type<tc>, window_params = [{transform_indices = @transform_0, window_bounds = array<i64: 1, 16, 128>}, {transform_indices = @transform_1, window_bounds = array<i64: 1, 1, 2, 128>}, {transform_indices = @transform_2, window_bounds = array<i64: 1, 5, 16, 128>}]} {
    %c0 = arith.constant 0 : index
    %c0_0 = arith.constant 0 : index
    %c0_1 = arith.constant 0 : index
    %0 = vector.load %arg2[%c0, %c0_0, %c0_1] : memref<1x16x128xf32, #tpu.memory_space<vmem>>, vector<1x16x128xf32>
    %1 = vector.shape_cast %0 : vector<1x16x128xf32> to vector<16x128xf32>
    %c0_2 = arith.constant 0 : index
    %c0_3 = arith.constant 0 : index
    %c0_4 = arith.constant 0 : index
    %c0_5 = arith.constant 0 : index
    %2 = vector.load %arg3[%c0_2, %c0_3, %c0_4, %c0_5] : memref<1x1x2x128xf32, #tpu.memory_space<vmem>>, vector<1x1x2x128xf32>
    %3 = vector.shape_cast %2 : vector<1x1x2x128xf32> to vector<2x128xf32>
    %4 = vector.extract_strided_slice %3 {offsets = [0, 0], sizes = [1, 128], strides = [1, 1]} : vector<2x128xf32> to vector<1x128xf32>
    %5 = vector.extract_strided_slice %3 {offsets = [1, 0], sizes = [1, 128], strides = [1, 1]} : vector<2x128xf32> to vector<1x128xf32>
    %6 = tpu.iota {dimensions = array<i32: 0>} : vector<16x1xi32>
    %7 = tpu.iota {dimensions = array<i32: 1>} : vector<1x128xi32>
    %c0_i32 = arith.constant 0 : i32
    %8 = vector.broadcast %c0_i32 : i32 to vector<16x1xi32>
    %9 = arith.cmpi eq, %6, %8 : vector<16x1xi32>
    %c15_i32 = arith.constant 15 : i32
    %10 = vector.broadcast %c15_i32 : i32 to vector<16x1xi32>
    %11 = arith.cmpi eq, %6, %10 : vector<16x1xi32>
    %c0_i32_6 = arith.constant 0 : i32
    %12 = vector.broadcast %c0_i32_6 : i32 to vector<1x128xi32>
    %13 = arith.cmpi eq, %7, %12 : vector<1x128xi32>
    %c127_i32 = arith.constant 127 : i32
    %14 = vector.broadcast %c127_i32 : i32 to vector<1x128xi32>
    %15 = arith.cmpi eq, %7, %14 : vector<1x128xi32>
    %c1_i32 = arith.constant 1 : i32
    %16 = tpu.dynamic_rotate %1 by %c1_i32 dim 0 : vector<16x128xf32>, i32 -> vector<16x128xf32>
    %17 = vector.shape_cast %9 : vector<16x1xi1> to vector<16x1xi1>
    %18 = vector.broadcast %17 : vector<16x1xi1> to vector<16x128xi1>
    %19 = vector.shape_cast %4 : vector<1x128xf32> to vector<1x128xf32>
    %20 = vector.broadcast %19 : vector<1x128xf32> to vector<16x128xf32>
    %21 = arith.select %18, %20, %16 : vector<16x128xi1>, vector<16x128xf32>
    %c15_i32_7 = arith.constant 15 : i32
    %22 = tpu.dynamic_rotate %1 by %c15_i32_7 dim 0 : vector<16x128xf32>, i32 -> vector<16x128xf32>
    %23 = vector.shape_cast %11 : vector<16x1xi1> to vector<16x1xi1>
    %24 = vector.broadcast %23 : vector<16x1xi1> to vector<16x128xi1>
    %25 = vector.shape_cast %5 : vector<1x128xf32> to vector<1x128xf32>
    %26 = vector.broadcast %25 : vector<1x128xf32> to vector<16x128xf32>
    %27 = arith.select %24, %26, %22 : vector<16x128xi1>, vector<16x128xf32>
    %28 = vector.extract_strided_slice %21 {offsets = [0, 0], sizes = [16, 1], strides = [1, 1]} : vector<16x128xf32> to vector<16x1xf32>
    %c1_i32_8 = arith.constant 1 : i32
    %29 = tpu.dynamic_rotate %21 by %c1_i32_8 dim 1 : vector<16x128xf32>, i32 -> vector<16x128xf32>
    %30 = vector.shape_cast %13 : vector<1x128xi1> to vector<1x128xi1>
    %31 = vector.broadcast %30 : vector<1x128xi1> to vector<16x128xi1>
    %32 = vector.shape_cast %28 : vector<16x1xf32> to vector<16x1xf32>
    %33 = vector.broadcast %32 : vector<16x1xf32> to vector<16x128xf32>
    %34 = arith.select %31, %33, %29 : vector<16x128xi1>, vector<16x128xf32>
    %c0_9 = arith.constant 0 : index
    %c0_10 = arith.constant 0 : index
    %c0_11 = arith.constant 0 : index
    %c0_12 = arith.constant 0 : index
    %35 = vector.load %arg4[%c0_9, %c0_10, %c0_11, %c0_12] : memref<1x5x16x128xf32, #tpu.memory_space<vmem>>, vector<1x1x16x128xf32>
    %36 = vector.shape_cast %35 : vector<1x1x16x128xf32> to vector<16x128xf32>
    %37 = vector.shape_cast %34 : vector<16x128xf32> to vector<1x1x16x128xf32>
    tpu.vector_store %arg4[%c0_9, %c0_10, %c0_11, %c0_12], %37 {strides = array<i32>} : memref<1x5x16x128xf32, #tpu.memory_space<vmem>>, vector<1x1x16x128xf32>,
    %c0_13 = arith.constant 0 : index
    %c1 = arith.constant 1 : index
    %c0_14 = arith.constant 0 : index
    %c0_15 = arith.constant 0 : index
    %38 = vector.load %arg4[%c0_13, %c1, %c0_14, %c0_15] : memref<1x5x16x128xf32, #tpu.memory_space<vmem>>, vector<1x1x16x128xf32>
    %39 = vector.shape_cast %38 : vector<1x1x16x128xf32> to vector<16x128xf32>
    %40 = vector.shape_cast %1 : vector<16x128xf32> to vector<1x1x16x128xf32>
    tpu.vector_store %arg4[%c0_13, %c1, %c0_14, %c0_15], %40 {strides = array<i32>} : memref<1x5x16x128xf32, #tpu.memory_space<vmem>>, vector<1x1x16x128xf32>,
    %41 = vector.extract_strided_slice %27 {offsets = [0, 127], sizes = [16, 1], strides = [1, 1]} : vector<16x128xf32> to vector<16x1xf32>
    %c127_i32_16 = arith.constant 127 : i32
    %42 = tpu.dynamic_rotate %27 by %c127_i32_16 dim 1 : vector<16x128xf32>, i32 -> vector<16x128xf32>
    %43 = vector.shape_cast %15 : vector<1x128xi1> to vector<1x128xi1>
    %44 = vector.broadcast %43 : vector<1x128xi1> to vector<16x128xi1>
    %45 = vector.shape_cast %41 : vector<16x1xf32> to vector<16x1xf32>
    %46 = vector.broadcast %45 : vector<16x1xf32> to vector<16x128xf32>
    %47 = arith.select %44, %46, %42 : vector<16x128xi1>, vector<16x128xf32>
    %c0_17 = arith.constant 0 : index
    %c2 = arith.constant 2 : index
    %c0_18 = arith.constant 0 : index
    %c0_19 = arith.constant 0 : index
    %48 = vector.load %arg4[%c0_17, %c2, %c0_18, %c0_19] : memref<1x5x16x128xf32, #tpu.memory_space<vmem>>, vector<1x1x16x128xf32>
    %49 = vector.shape_cast %48 : vector<1x1x16x128xf32> to vector<16x128xf32>
    %50 = vector.shape_cast %47 : vector<16x128xf32> to vector<1x1x16x128xf32>
    tpu.vector_store %arg4[%c0_17, %c2, %c0_18, %c0_19], %50 {strides = array<i32>} : memref<1x5x16x128xf32, #tpu.memory_space<vmem>>, vector<1x1x16x128xf32>,
    %51 = vector.extract_strided_slice %27 {offsets = [0, 0], sizes = [16, 1], strides = [1, 1]} : vector<16x128xf32> to vector<16x1xf32>
    %c1_i32_20 = arith.constant 1 : i32
    %52 = tpu.dynamic_rotate %27 by %c1_i32_20 dim 1 : vector<16x128xf32>, i32 -> vector<16x128xf32>
    %53 = vector.shape_cast %13 : vector<1x128xi1> to vector<1x128xi1>
    %54 = vector.broadcast %53 : vector<1x128xi1> to vector<16x128xi1>
    %55 = vector.shape_cast %51 : vector<16x1xf32> to vector<16x1xf32>
    %56 = vector.broadcast %55 : vector<16x1xf32> to vector<16x128xf32>
    %57 = arith.select %54, %56, %52 : vector<16x128xi1>, vector<16x128xf32>
    %c0_21 = arith.constant 0 : index
    %c3 = arith.constant 3 : index
    %c0_22 = arith.constant 0 : index
    %c0_23 = arith.constant 0 : index
    %58 = vector.load %arg4[%c0_21, %c3, %c0_22, %c0_23] : memref<1x5x16x128xf32, #tpu.memory_space<vmem>>, vector<1x1x16x128xf32>
    %59 = vector.shape_cast %58 : vector<1x1x16x128xf32> to vector<16x128xf32>
    %60 = vector.shape_cast %57 : vector<16x128xf32> to vector<1x1x16x128xf32>
    tpu.vector_store %arg4[%c0_21, %c3, %c0_22, %c0_23], %60 {strides = array<i32>} : memref<1x5x16x128xf32, #tpu.memory_space<vmem>>, vector<1x1x16x128xf32>,
    %61 = vector.extract_strided_slice %21 {offsets = [0, 127], sizes = [16, 1], strides = [1, 1]} : vector<16x128xf32> to vector<16x1xf32>
    %c127_i32_24 = arith.constant 127 : i32
    %62 = tpu.dynamic_rotate %21 by %c127_i32_24 dim 1 : vector<16x128xf32>, i32 -> vector<16x128xf32>
    %63 = vector.shape_cast %15 : vector<1x128xi1> to vector<1x128xi1>
    %64 = vector.broadcast %63 : vector<1x128xi1> to vector<16x128xi1>
    %65 = vector.shape_cast %61 : vector<16x1xf32> to vector<16x1xf32>
    %66 = vector.broadcast %65 : vector<16x1xf32> to vector<16x128xf32>
    %67 = arith.select %64, %66, %62 : vector<16x128xi1>, vector<16x128xf32>
    %c0_25 = arith.constant 0 : index
    %c4 = arith.constant 4 : index
    %c0_26 = arith.constant 0 : index
    %c0_27 = arith.constant 0 : index
    %68 = vector.load %arg4[%c0_25, %c4, %c0_26, %c0_27] : memref<1x5x16x128xf32, #tpu.memory_space<vmem>>, vector<1x1x16x128xf32>
    %69 = vector.shape_cast %68 : vector<1x1x16x128xf32> to vector<16x128xf32>
    %70 = vector.shape_cast %67 : vector<16x128xf32> to vector<1x1x16x128xf32>
    tpu.vector_store %arg4[%c0_25, %c4, %c0_26, %c0_27], %70 {strides = array<i32>} : memref<1x5x16x128xf32, #tpu.memory_space<vmem>>, vector<1x1x16x128xf32>,
    return
  }
  func.func @transform_0(%arg0: i32, %arg1: i32) -> (i32, i32, i32) {
    %c0_i32 = arith.constant 0 : i32
    %c0_i32_0 = arith.constant 0 : i32
    return %arg0, %arg1, %c0_i32 : i32, i32, i32
  }
  func.func @transform_1(%arg0: i32, %arg1: i32) -> (i32, i32, i32, i32) {
    %c0_i32 = arith.constant 0 : i32
    %c0_i32_0 = arith.constant 0 : i32
    %c0_i32_1 = arith.constant 0 : i32
    return %arg0, %arg1, %c0_i32, %c0_i32_0 : i32, i32, i32, i32
  }
  func.func @transform_2(%arg0: i32, %arg1: i32) -> (i32, i32, i32, i32) {
    %c0_i32 = arith.constant 0 : i32
    %c0_i32_0 = arith.constant 0 : i32
    %c0_i32_1 = arith.constant 0 : i32
    return %arg0, %c0_i32, %arg1, %c0_i32_0 : i32, i32, i32, i32
  }
}

</mosaic_0001>

<bundles_post_ra>
// kernel: tpu_custom_call.1
= control target key start
LH: loop header
LB: loop body
LE: loop exit
PB: predicated region body
PF: predicated region fallthrough
CT: control target
= control target key end

     0   :  { %7 = vsyncpa [#allocation3], 0  ;;  %s994_s0 = inlined_call_operand.hbm [shape: f32[2,16,128], index: 0, kind: input, shape index: {}]   ;;  %s995_s1 = inlined_call_operand.hbm [shape: f32[2,1,2,128], index: 1, kind: input, shape index: {}]   ;;  %s996_s2 = inlined_call_operand.hbm [shape: f32[2,5,16,128], index: 2, kind: output, shape index: {}]  }
   0x1   :  { %9 = vsyncpa [#allocation3 + $0x1], 0 }
   0x2   :  { %10 = vsyncpa [#allocation6], 0 }
   0x3   :  { %12 = vsyncpa [#allocation6 + $0x1], 0 }
   0x4   :  { %13 = vsyncpa [#allocation4], 0 }
   0x5   :  { %15 = vsyncpa [#allocation4 + $0x1], 0  ;;  %s751_s9 = smov 0   ;;  %s753_s10 = smov 0  }
   0x6   :  { %s755_s11 = smov 0   ;;  %s757_s12 = smov 0  }
   0x7   :  { %s759_s13 = smov 0   ;;  %s761_s14 = smov 0  }
   0x8 LB: > { %s471_s15 = sadd.s32 4294967295, %s723_s14   ;;  %s472_s16 = sadd.s32 4294967294, %s723_s14   ;;  %s723_s14 = sphi %s761_s14, %s21_s14   ;;  %s719_s13 = sphi %s759_s13, %s1015_s13   ;;  %s715_s12 = sphi %s757_s12, %s1014_s12   ;;  %s711_s11 = sphi %s755_s11, %s1013_s11   ;;  %s707_s10 = sphi %s753_s10, %s1012_s10   ;;  %s703_s9 = sphi %s751_s9, %s1011_s9  }
   0x9   : > { %s33_s17 = sadd.s32 1, %s719_s13  ;;  %s42_s18 = sadd.s32 1, %s711_s11 }
   0xa   : > { %p35_p0 = scmp.ge.s32.totalorder %s33_s17, 2  ;;  %p49_p1 = scmp.ne.s32.totalorder %s711_s11, %s707_s10 }
   0xb   : > { %p50_p2 = scmp.eq.s32.totalorder %s723_s14, 0  ;;  %p55_p3 = scmp.ne.s32.totalorder %s707_s10, %s703_s9 }
   0xc   : > { %s1017_s17 = smov (%p35_p0, %s33_s17), 0  ;;  %p56_p5 = scmp.eq.s32.totalorder %s471_s15, 0 }
   0xd   : > { %p792_p4 = por %p50_p2, %p49_p1  ;;  %s37_s20 = ssub.s32 %s719_s13, %s1017_s17 }
   0xe   : > { %p109_p6 = scmp.eq.s32.totalorder %s471_s15, 1  ;;  %p40_p7 = scmp.eq.s32.totalorder %s37_s20, 0 }
   0xf   : > { %p798_p8 = por %p56_p5, %p55_p3  ;;  %p115_p10 = scmp.eq.s32.totalorder %s472_s16, 1 }
  0x10   : > { %p802_p9 = por %p109_p6, %p49_p1  ;;  %p514_p13 = scmp.lt.s32.totalorder %s723_s14, 2 }
  0x11   : > { %s1000_s21 = scalar_select %p798_p8, 1, 0 }
  0x12   : > { %s1001_s22 = scalar_select %p802_p9, 1, 0 }
  0x13   : > { %s807_s23 = scalar_select %p40_p7, %s711_s11, %s42_s18  }
  0x14   : > { %p809_p11 = por %p115_p10, %p55_p3  ;;  %s816_s25 = sand.u32 1, %s711_s11  }
  0x15   : > { %s475_s26 = sshll.u32 %s816_s25, 4  ;;  %s494_s27 = sshll.u32 %s719_s13, 8 }
  0x16   : > { %s1002_s24 = scalar_select %p809_p11, 1, 0 }
  0x17   : > { %s823_s30 = scalar_lea.hbm %s994_s0, %s494_s27  ;;  %s139_s3 = scalar_lea.vmem [#allocation2], %s475_s26 }
  0x18   : > { %s148_s4 = sshll.u32 %s139_s3, 4  ;;  %p829_p0 = pnand %p514_p13, %p792_p4  ;;  %s825_s4 = int_to_ptr.vmem [resolvable:$true] %s148_s4 }
  0x19   : > { %s136_s6 = scalar_lea.sflag [#allocation3], %s816_s25  ;;  %s577_s7 = scalar_lea.hbm %s823_s30, 256 }
  0x1a   : > { %p578_p2 = scmp.ne.s32.totalorder %s823_s30, %s577_s7  ;;  %p579_p3 = pneg %p829_p0 }
  0x1b   : > { %s582_s16 = scalar_lea.hbm %s994_s0, 512  ;;  %p583_p4 = scmp.lt.u32.totalorder %s823_s30, %s994_s0 }
  0x1c   : > { %p580_p5 = pnand %p579_p3, %p578_p2  ;;  %p584_p7 = scmp.lt.u32.totalorder %s582_s16, %s577_s7 }
  0x1d   : > { %p586_p13 = scmp.lt.u32.totalorder %s577_s7, %s823_s30 }
  0x1e   : > { %p581_p6 = pneg %p580_p5  ;;  %p585_p10 = por %p584_p7, %p583_p4 }
  0x20   : > { %p587_p12 = por %p586_p13, %p585_p10 }
  0x22   : > { %p588_p1 = pnand %p587_p12, %p581_p6 }
  0x24   : > { %591 = shalt.err (!%p588_p1)
}
  0x25   : > { %s592_s20 = scalar_lea.vmem %s825_s4, 256  ;;  %s725_s26 = smov [#allocation2]  }
  0x26   : > { %p593_p2 = scmp.ne.s32.totalorder %s825_s4, %s592_s20  ;;  %s597_s27 = sshll.u32 %s725_s26, 4  ;;  %s598_s27 = int_to_ptr.vmem [resolvable:$false] %s597_s27 }
  0x27   : > { %s599_s28 = scalar_lea.vmem %s598_s27, 512  ;;  %p600_p9 = scmp.lt.s32.totalorder %s825_s4, %s598_s27 }
  0x28   : > { %p595_p5 = pnand %p593_p2, %p579_p3  ;;  %p601_p4 = scmp.lt.s32.totalorder %s599_s28, %s592_s20 }
  0x2a   : > { %p596_p11 = pneg %p595_p5  ;;  %p602_p7 = por %p601_p4, %p600_p9 }
  0x2c   : > { %p603_p10 = pnand %p602_p7, %p596_p11 }
  0x2e   : > { %606 = shalt.err (!%p603_p10)
}
  0x2f   : > { %s726_s29 = smov 128   ;;  %s727_s3 = smov 8  }
  0x30   : > { %506 = dma.hbm_to_vmem [thread:$0]  (!%p829_p0), %s823_s30, 256, %s825_s4, %s136_s6, %s726_s29, %s726_s29, %s727_s3  }
  0x31   : > { %p175_p12 = scmp.lt.s32.totalorder %s723_s14, 3  ;;  %s478_s7 = sshll.u32 %s816_s25, 1 }
  0x32   : > { %s479_s8 = sshll.u32 %s719_s13, 5  ;;  %p1004_p9 = scmp.ge.s32.totalorder %s723_s14, 1 }
  0x33   : > { %s874_s19 = scalar_lea.hbm %s995_s1, %s479_s8  ;;  %s162_s20 = scalar_lea.vmem [#allocation5], %s478_s7 }
  0x34   : > { %p867_p11 = pnand %p1004_p9, %p175_p12  ;;  %s170_s26 = sshll.u32 %s162_s20, 4  ;;  %s171_s26 = int_to_ptr.vmem [resolvable:$true] %s170_s26 }
  0x35   : > { %s159_s30 = scalar_lea.sflag [#allocation6], %s816_s25  ;;  %s607_s4 = scalar_lea.hbm %s874_s19, 32 }
  0x36   : > { %s1005_s15 = scalar_select %p867_p11, 1, 0 }
  0x37   : > { %p608_p1 = scmp.ne.s32.totalorder %s874_s19, %s607_s4  ;;  %s612_s28 = scalar_lea.hbm %s995_s1, 64 }
  0x38   : > { %p613_p2 = scmp.lt.u32.totalorder %s874_s19, %s995_s1  ;;  %p614_p5 = scmp.lt.u32.totalorder %s612_s28, %s607_s4 }
  0x39   : > { %p610_p6 = pnand %p608_p1, %p579_p3  ;;  %p616_p7 = scmp.lt.u32.totalorder %s607_s4, %s874_s19 }
  0x3a   : > { %p615_p4 = por %p614_p5, %p613_p2 }
  0x3b   : > { %p611_p13 = pneg %p610_p6 }
  0x3c   : > { %p617_p10 = por %p616_p7, %p615_p4 }
  0x3e   : > { %p618_p12 = pnand %p617_p10, %p611_p13 }
  0x40   : > { %621 = shalt.err (!%p618_p12)
}
  0x41   : > { %s622_s25 = scalar_lea.vmem %s171_s26, 32  ;;  %s728_s7 = smov [#allocation5]  }
  0x42   : > { %p623_p9 = scmp.ne.s32.totalorder %s171_s26, %s622_s25  ;;  %s627_s8 = sshll.u32 %s728_s7, 4  ;;  %s628_s8 = int_to_ptr.vmem [resolvable:$false] %s627_s8 }
  0x43   : > { %s629_s16 = scalar_lea.vmem %s628_s8, 64  ;;  %p630_p8 = scmp.lt.s32.totalorder %s171_s26, %s628_s8 }
  0x44   : > { %p625_p1 = pnand %p623_p9, %p579_p3  ;;  %p631_p11 = scmp.lt.s32.totalorder %s629_s16, %s622_s25 }
  0x46   : > { %p626_p6 = pneg %p625_p1  ;;  %p632_p2 = por %p631_p11, %p630_p8 }
  0x48   : > { %p633_p5 = pnand %p632_p2, %p626_p6 }
  0x4a   : > { %636 = shalt.err (!%p633_p5)
}
  0x4b   : > { %509 = dma.hbm_to_vmem [thread:$0]  (!%p829_p0), %s874_s19, 32, %s171_s26, %s159_s30  }
  0x4c   : > { %p1006_p13 = scmp.ne.s32.totalorder %s1005_s15, 0 }
  0x4d   : > { %s899_s18 = sand.u32 (!%p1006_p13), 1, %s707_s10   ;;  %p1007_p3 = scmp.ne.s32.totalorder (!%p1006_p13), %s1000_s21, 0 }
  0x4e   : > { %179 = sbr.rel (%p1006_p13) target bundleno = 269 (0x10d), region = 28  ;;  %s481_s20 = sshll.u32 (!%p1006_p13), %s899_s18, 4 }
  0x4f   : > { %s182_s4 = scalar_lea.sflag (!%p1006_p13), [#allocation3], %s899_s18  ;;  %s185_s6 = scalar_lea.vmem (!%p1006_p13), [#allocation2], %s481_s20 }
  0x55   : > { %690 = dma.done.wait (%p1007_p3), %s182_s4, 256  }
  0x56   : > { %692 = vsyncadd (%p1007_p3), %s182_s4, 4294967040  ;;  %s482_s5 = sshll.u32 %s899_s18, 1  ;;  %s191_s15 = scalar_lea.sflag [#allocation6], %s899_s18 }
  0x57   : > { %s194_s19 = scalar_lea.vmem [#allocation5], %s482_s5 }
  0x58   : > { %694 = dma.done.wait (%p1007_p3), %s191_s15, 32  }
  0x59   : > { %696 = vsyncadd (%p1007_p3), %s191_s15, 4294967264  ;;  %v225_v0 = vlaneseq  ;;  %v729_v1 = vmov 127   ;;  %v730_v2 = vmov 0   ;;  %s495_s26 = smul.u32 80, %s899_s18  ;;  %v222_v6 = vld [vmem:[%s185_s6] sm:$0xff]  ;;  %v223_v7 = vld [vmem:[%s185_s6 + $0x8] sm:$0xff] }
  0x5a   : > { %573 = vset.pattern.permute.xlu1 %v729_v1  ;;  %572 = vset.pattern.permute.xlu0 %v730_v2  ;;  %v224_v8 = vld [vmem:[%s194_s19] sm:$0x3]  ;;  %v251_v10 = vrot.slane %v222_v6, 1  ;;  %v252_v11 = vrot.slane %v223_v7, 1  ;;  %v236_v12 = vrot.slane %v222_v6, 7  ;;  %v237_v13 = vrot.slane %v223_v7, 7 }
  0x5b   : > { %v226_v3 = vshrl.u32 %v225_v0, 7  ;;  %s914_s21 = scalar_lea.vmem [#allocation7], %s495_s26  ;;  %s731_s30 = smov 1   ;;  %v229_v28 = vand.u32 127, %v225_v0 }
  0x5c   : > { %483 = vst [vmem:[%s914_s21 + $0x10] sm:$0xff] %v222_v6  ;;  %484 = vst [vmem:[%s914_s21 + $0x18] sm:$0xff] %v223_v7  ;;  %s732_s27 = smov 127   ;;  %s496_s28 = smul.u32 1280, %s715_s12 }
  0x5d   : > { %v227_v4 = vadd.s32 8, %v226_v3  ;;  %v262_v5 = vsub.s32 1, %v226_v3  ;;  %vm253_vm0 = vcmp.lt.s32.totalorder %v226_v3, 7  ;;  %vm238_vm1 = vcmp.lt.s32.totalorder %v226_v3, 1  ;;  %s360_s29 = sshll.u32 %s914_s21, 4  ;;  %s345_s12 = scalar_lea.sflag [#allocation4], %s899_s18  ;;  %s941_s29 = int_to_ptr.vmem [resolvable:$true] %s360_s29 }
  0x5e   : > { %v247_v9 = vsub.s32 0, %v226_v3  ;;  %v254_v15 = vsel %vm253_vm0, %v251_v10, %v252_v11  ;;  %v239_v16 = vsel %vm238_vm1, %v236_v12, %v237_v13  ;;  %v255_v17 = vsel %vm253_vm0, %v252_v11, %v251_v10  ;;  %s939_s7 = scalar_lea.hbm %s996_s2, %s496_s28  ;;  %s637_s8 = scalar_lea.vmem %s941_s29, 1280 }
  0x5f   : > { %vm233_vm2 = vcmp.eq.s32.totalorder %v227_v4, 15  ;;  %v263_v14 = vrot.slane %v224_v8, %v262_v5  ;;  %297 = vperm.xlu1 %573, %v254_v15   ;;  %279 = vperm.xlu0 %572, %v239_v16   ;;  %vm230_vm3 = vcmp.eq.s32.totalorder %v226_v3, 0  ;;  %v240_v20 = vsel %vm238_vm1, %v237_v13, %v236_v12  ;;  %p638_p8 = scmp.ne.s32.totalorder %s941_s29, %s637_s8  ;;  %p1008_p0 = scmp.ne.s32.totalorder %s1001_s22, 0 }
  0x60   : > { %v248_v19 = vrot.slane %v224_v8, %v247_v9  ;;  %vm234_vm4 = vcmp.eq.s32.totalorder %v229_v28, 0  ;;  %vm235_vm5 = vcmp.eq.s32.totalorder %v229_v28, 127  ;;  %s733_s16 = smov [#allocation7]  }
  0x61   : > { %v265_v18 = vsel %vm233_vm2, %v263_v14, %v255_v17  ;;  %p639_p11 = pnand %p638_p8, %p1008_p0  ;;  %s641_s20 = sshll.u32 %s733_s16, 4  ;;  %s642_s20 = int_to_ptr.vmem [resolvable:$false] %s641_s20 }
  0x62   : > { %v249_v21 = vsel %vm230_vm3, %v248_v19, %v240_v20  ;;  %s643_s4 = scalar_lea.vmem %s642_s20, 2560  ;;  %p644_p7 = scmp.lt.s32.totalorder %s941_s29, %s642_s20 }
  0x63   : > { %302 = vperm.xlu1 %573, %v265_v18   ;;  %315 = vperm.xlu0 %572, %v254_v15   ;;  %p640_p4 = pneg %p639_p11  ;;  %p645_p10 = scmp.lt.s32.totalorder %s643_s4, %s637_s8 }
  0x65   : > { %p646_p12 = por %p645_p10, %p644_p7 }
  0x67   : > { %574 = vset.pattern.permute.xlu1 %v730_v2  ;;  %274 = vperm.xlu0 %572, %v249_v21   ;;  %p647_p9 = pnand %p646_p12, %p640_p4 }
  0x68   : > { %319 = vperm.xlu1 %574, %v265_v18  }
  0x6b   : > { %575 = vset.pattern.permute.xlu0 %v729_v1 }
  0x6c   : > { %576 = vset.pattern.permute.xlu1 %v729_v1  ;;  %332 = vperm.xlu0 %575, %v249_v21  }
  0x6d   : > { %336 = vperm.xlu1 %576, %v239_v16  }
  0x70   : > { %268 = vrot.lane.b32.xlu0 %v239_v16, %s731_s30 }
  0x71   : > { %266 = vrot.lane.b32.xlu1 %v249_v21, %s731_s30 }
  0x74   : > { %291 = vrot.lane.b32.xlu0 %v265_v18, %s732_s27 }
  0x75   : > { %289 = vrot.lane.b32.xlu1 %v254_v15, %s732_s27 }
  0x78   : > { %312 = vrot.lane.b32.xlu0 %v265_v18, %s731_s30 }
  0x79   : > { %310 = vrot.lane.b32.xlu1 %v254_v15, %s731_s30 }
  0x7c   : > { %329 = vrot.lane.b32.xlu0 %v239_v16, %s732_s27 }
  0x7d   : > { %327 = vrot.lane.b32.xlu1 %v249_v21, %s732_s27 }
  0xde   : > { %v298_v22 = vpop.permute.xlu1 %297  ;;  %v280_v23 = vpop.permute.xlu0 %279 }
  0xe2   : > { %v303_v24 = vpop.permute.xlu1 %302  ;;  %v316_v25 = vpop.permute.xlu0 %315 }
  0xe6   : > { %v275_v26 = vpop.permute.xlu0 %274 }
  0xe7   : > { %v320_v27 = vpop.permute.xlu1 %319 }
  0xeb   : > { %v333_v29 = vpop.permute.xlu0 %332 }
  0xec   : > { %v337_v30 = vpop.permute.xlu1 %336 }
  0xef   : > { %v269_v31 = vpop.permute.xlu0 %268 }
  0xf0   : > { %v283_v32 = vsel %vm234_vm4, %v280_v23, %v269_v31  ;;  %v267_v33 = vpop.permute.xlu1 %266 }
  0xf1   : > { %285 = vst [vmem:[%s914_s21 + $0x8] sm:$0xff] %v283_v32  ;;  %v282_v34 = vsel %vm234_vm4, %v275_v26, %v267_v33 }
  0xf2   : > { %284 = vst [vmem:[%s914_s21] sm:$0xff] %v282_v34 }
  0xf3   : > { %v292_v35 = vpop.permute.xlu0 %291 }
  0xf4   : > { %v306_v36 = vsel %vm235_vm5, %v303_v24, %v292_v35  ;;  %v290_v37 = vpop.permute.xlu1 %289 }
  0xf5   : > { %486 = vst [vmem:[%s914_s21 + $0x28] sm:$0xff] %v306_v36  ;;  %v305_v38 = vsel %vm235_vm5, %v298_v22, %v290_v37 }
  0xf6   : > { %485 = vst [vmem:[%s914_s21 + $0x20] sm:$0xff] %v305_v38 }
  0xf7   : > { %v313_v39 = vpop.permute.xlu0 %312 }
  0xf8   : > { %v323_v40 = vsel %vm234_vm4, %v320_v27, %v313_v39  ;;  %v311_v41 = vpop.permute.xlu1 %310 }
  0xf9   : > { %488 = vst [vmem:[%s914_s21 + $0x38] sm:$0xff] %v323_v40  ;;  %v322_v42 = vsel %vm234_vm4, %v316_v25, %v311_v41 }
  0xfa   : > { %487 = vst [vmem:[%s914_s21 + $0x30] sm:$0xff] %v322_v42 }
  0xfb   : > { %v330_v43 = vpop.permute.xlu0 %329 }
  0xfc   : > { %v340_v44 = vsel %vm235_vm5, %v337_v30, %v330_v43  ;;  %v328_v45 = vpop.permute.xlu1 %327 }
  0xfd   : > { %490 = vst [vmem:[%s914_s21 + $0x48] sm:$0xff] %v340_v44  ;;  %v339_v46 = vsel %vm235_vm5, %v333_v29, %v328_v45 }
  0xfe   : > { %489 = vst [vmem:[%s914_s21 + $0x40] sm:$0xff] %v339_v46 }
  0xff   : > { %650 = shalt.err (!%p647_p9)
}
 0x100   : > { %s651_s6 = scalar_lea.hbm %s939_s7, 1280  ;;  %s655_s19 = scalar_lea.hbm %s996_s2, 2560 }
 0x101   : > { %p652_p1 = scmp.ne.s32.totalorder %s939_s7, %s651_s6  ;;  %p656_p5 = scmp.lt.u32.totalorder %s939_s7, %s996_s2 }
 0x102   : > { %p657_p13 = scmp.lt.u32.totalorder %s655_s19, %s651_s6  ;;  %p659_p8 = scmp.lt.u32.totalorder %s651_s6, %s939_s7 }
 0x103   : > { %p653_p6 = pnand %p652_p1, %p1008_p0 }
 0x104   : > { %p658_p3 = por %p657_p13, %p656_p5 }
 0x105   : > { %p654_p2 = pneg %p653_p6 }
 0x106   : > { %p660_p11 = por %p659_p8, %p658_p3 }
 0x108   : > { %p661_p4 = pnand %p660_p11, %p654_p2 }
 0x10a   : > { %664 = shalt.err (!%p661_p4)
}
 0x10b   : > { %s734_s30 = smov 128   ;;  %s735_s27 = smov 8  }
 0x10c   : > { %501 = dma.vmem_to_hbm [thread:$0]  (%p1008_p0), %s941_s29, 1280, %s939_s7, %s345_s12, %s734_s30, %s734_s30, %s735_s27  }
 0x10d PF: > { %s375_s28 = sand.u32 1, %s703_s9   ;;  %p1009_p7 = scmp.ne.s32.totalorder %s1002_s24, 0 }
 0x10e   : > { %p1010_p10 = scmp.ge.s32.totalorder %s723_s14, 2  ;;  %s376_s3 = scalar_lea.sflag [#allocation4], %s375_s28 }
 0x110   : > { %p511_p12 = pnand %p1010_p10, %p1009_p7 }
 0x112   : > { %698 = dma.done.wait (!%p511_p12), %s376_s3, 1280  }
 0x113   : > { %700 = vsyncadd (!%p511_p12), %s376_s3, 4294966016  ;;  %s21_s14 = sadd.s32 1, %s723_s14   ;;  %s1011_s9 = smov %s707_s10 }
 0x114   : > { %p18_p9 = scmp.ge.s32.totalorder %s21_s14, 4   ;;  %s1012_s10 = smov %s711_s11 }
 0x115   : > { %s1013_s11 = smov %s807_s23  ;;  %s1014_s12 = smov %s719_s13 }
 0x116   : > { %s1015_s13 = smov %s1017_s17  ;;  %20 = sbr.rel (!%p18_p9) target bundleno = 8 (0x8), region = 90 }
 0x11d   :  { %381 = vsyncpa [#allocation3], 1 }
 0x11e   :  { %383 = vsyncpa [#allocation3 + $0x1], 1 }
 0x11f   :  { %384 = vsyncpa [#allocation6], 1 }
 0x120   :  { %386 = vsyncpa [#allocation6 + $0x1], 1 }
 0x121   :  { %387 = vsyncpa [#allocation4], 1 }
 0x122   :  { %389 = vsyncpa [#allocation4 + $0x1], 1 }

</bundles_post_ra>
